<compile_context>
chip_gen: v5e
topology: v5e:2x2
jax: 0.10.0
libtpu: 0.0.40
codegen_flags: <defaults>
</compile_context>

<pallas_src>
import jax
import jax.numpy as jnp
from jax.experimental import pallas as pl
from jax.experimental.pallas import tpu as pltpu


N_LISTS = 4        # len(captions)
CAPS_PER_LIST = 8  # captions per list (sublane-aligned)
MAX_TOKENS = 128   # padded token length (lane-aligned)


# --------------------------------------------------------------------------
# Kernels: pure HBM -> HBM DMA of the selected caption list(s).
# --------------------------------------------------------------------------
def _select_one_kernel(idx_ref, x_hbm, o_hbm, sem):
    # Single selection: copy captions[idx] straight into the output buffer.
    cp = pltpu.make_async_copy(x_hbm.at[idx_ref[0]], o_hbm, sem)
    cp.start()
    cp.wait()


def _select_batch_kernel(idx_ref, x_hbm, o_hbm, sem):
    # One selection per grid step: out[b] = captions[idx[b]].
    b = pl.program_id(0)
    cp = pltpu.make_async_copy(x_hbm.at[idx_ref[b]], o_hbm.at[b], sem)
    cp.start()
    cp.wait()


# --------------------------------------------------------------------------
# pallas_call wrappers
# --------------------------------------------------------------------------
@jax.jit
def _select_one_pallas(captions, index):
    _, caps, toks = captions.shape
    idx = jnp.asarray(index, jnp.int32).reshape((1,))
    grid_spec = pltpu.PrefetchScalarGridSpec(
        num_scalar_prefetch=1,
        grid=(1,),
        in_specs=[pl.BlockSpec(memory_space=pl.ANY)],   # raw HBM ref, no auto-DMA
        out_specs=pl.BlockSpec(memory_space=pl.ANY),    # kernel DMAs the output
        scratch_shapes=[pltpu.SemaphoreType.DMA(())],
    )
    return pl.pallas_call(
        _select_one_kernel,
        grid_spec=grid_spec,
        out_shape=jax.ShapeDtypeStruct((caps, toks), captions.dtype),
        compiler_params=pltpu.CompilerParams(
            dimension_semantics=("arbitrary",),
        ),
    )(idx, captions)


@jax.jit
def _select_batch_pallas(captions, indices):
    n, caps, toks = captions.shape
    batch = indices.shape[0]
    # Defensive clamp: an out-of-range index must not drive the DMA OOB.
    idx = jnp.clip(indices.astype(jnp.int32), 0, n - 1)
    grid_spec = pltpu.PrefetchScalarGridSpec(
        num_scalar_prefetch=1,
        grid=(batch,),
        in_specs=[pl.BlockSpec(memory_space=pl.ANY)],
        out_specs=pl.BlockSpec(memory_space=pl.ANY),
        scratch_shapes=[pltpu.SemaphoreType.DMA(())],
    )
    return pl.pallas_call(
        _select_batch_kernel,
        grid_spec=grid_spec,
        out_shape=jax.ShapeDtypeStruct((batch, caps, toks), captions.dtype),
        compiler_params=pltpu.CompilerParams(
            # batch axis is independent -> megacore shards it on v7x
            dimension_semantics=("parallel",),
        ),
    )(idx, captions)


# --------------------------------------------------------------------------
# Public API (mirrors SelectCaptionList.forward)
# --------------------------------------------------------------------------
def select_caption_list(captions, mode="random", key=None):
    """JAX/Pallas equivalent of SelectCaptionList.forward.

    captions: int32 [N_LISTS, CAPS_PER_LIST, MAX_TOKENS]
    returns:  int32 [CAPS_PER_LIST, MAX_TOKENS]  (or the full tensor for "all")
    """
    n = captions.shape[0]
    if mode == "random":
        if key is None:
            key = jax.random.PRNGKey(0)
        index = jax.random.randint(key, (), 0, n, dtype=jnp.int32)
    elif mode == "all":
        return captions
    elif isinstance(mode, int) and not isinstance(mode, bool) and 0 <= mode < n:
        index = jnp.int32(mode)
    else:
        raise RuntimeError(
            f'Invalid SelectCaption mode "{mode}". Must be one of '
            f'("random", "all" or a non-negative index < {n}).'
        )
    return _select_one_pallas(captions, index)


def select_caption_lists_batched(captions, indices):
    """Batched selection: out[b] = captions[indices[b]].

    Amortizes the per-call launch overhead across many selections
    (one pallas_call, one grid step / DMA per selection).
    """
    indices = jnp.asarray(indices, jnp.int32)
    return _select_batch_pallas(captions, indices)


if __name__ == "__main__":
    key = jax.random.PRNGKey(0)
    k_data, k_sel = jax.random.split(key)

    # Deterministic synthetic "tokenized captions".
    captions = jax.random.randint(
        k_data, (N_LISTS, CAPS_PER_LIST, MAX_TOKENS), 0, 30000, dtype=jnp.int32
    )

    # Fixed-index mode.
    out_fixed = select_caption_list(captions, mode=2)
    jax.block_until_ready(out_fixed)
    assert out_fixed.shape == (CAPS_PER_LIST, MAX_TOKENS)
    assert jnp.array_equal(out_fixed, captions[2])

    # Index 0 is valid.
    out_zero = select_caption_list(captions, mode=0)
    jax.block_until_ready(out_zero)
    assert jnp.array_equal(out_zero, captions[0])

    # Random mode (index drawn from k_sel; verify against the same draw).
    rand_idx = int(jax.random.randint(k_sel, (), 0, N_LISTS, dtype=jnp.int32))
    out_rand = select_caption_list(captions, mode="random", key=k_sel)
    jax.block_until_ready(out_rand)
    assert jnp.array_equal(out_rand, captions[rand_idx])

    # "all" mode (pure passthrough glue).
    out_all = select_caption_list(captions, mode="all")
    jax.block_until_ready(out_all)
    assert out_all.shape == captions.shape

    # Batched selection (one pallas_call for many selections).
    indices = jnp.array([3, 0, 2, 1, 1, 0], dtype=jnp.int32)
    out_batch = select_caption_lists_batched(captions, indices)
    jax.block_until_ready(out_batch)
    assert out_batch.shape == (indices.shape[0], CAPS_PER_LIST, MAX_TOKENS)
    assert jnp.array_equal(out_batch, captions[indices])

    print("KERNEL_OK")
</pallas_src>

<mosaic_0001>
module attributes {stable_mosaic.version = 11 : i64} {
  func.func @_select_one_kernel(%arg0: i32, %arg1: memref<1xi32, #tpu.memory_space<smem>>, %arg2: memref<4x8x128xi32, #tpu.memory_space<any>>, %arg3: memref<8x128xi32, #tpu.memory_space<any>>, %arg4: memref<!tpu.dma_semaphore, #tpu.memory_space<semaphore_mem>>) attributes {dimension_semantics = [#tpu.dimension_semantics<arbitrary>], iteration_bounds = array<i64: 1>, scalar_prefetch = 1 : i64, scratch_operands = 1 : i64, tpu.core_type = #tpu.core_type<tc>, window_params = [{}, {}]} {
    %c0 = arith.constant 0 : index
    %0 = memref.load %arg1[%c0] : memref<1xi32, #tpu.memory_space<smem>>
    %c0_i32 = arith.constant 0 : i32
    %c0_i32_0 = arith.constant 0 : i32
    %1 = tpu.memref_slice %arg2[%0, %c0_i32, %c0_i32_0] : memref<4x8x128xi32, #tpu.memory_space<any>> -> memref<1x8x128xi32, #tpu.memory_space<any>>
    %2 = tpu.memref_squeeze %1 : memref<1x8x128xi32, #tpu.memory_space<any>> -> memref<8x128xi32, #tpu.memory_space<any>>
    tpu.enqueue_dma source(%2 : memref<8x128xi32, #tpu.memory_space<any>>) target(%arg3 : memref<8x128xi32, #tpu.memory_space<any>>) target_semaphore(%arg4 : memref<!tpu.dma_semaphore, #tpu.memory_space<semaphore_mem>>)
    %c0_i32_1 = arith.constant 0 : i32
    %c0_i32_2 = arith.constant 0 : i32
    %3 = tpu.memref_slice %arg2[%0, %c0_i32_1, %c0_i32_2] : memref<4x8x128xi32, #tpu.memory_space<any>> -> memref<1x8x128xi32, #tpu.memory_space<any>>
    %4 = tpu.memref_squeeze %3 : memref<1x8x128xi32, #tpu.memory_space<any>> -> memref<8x128xi32, #tpu.memory_space<any>>
    tpu.wait_dma2 semaphore(%arg4 : memref<!tpu.dma_semaphore, #tpu.memory_space<semaphore_mem>>) src(%4 : memref<8x128xi32, #tpu.memory_space<any>>) dst(%arg3 : memref<8x128xi32, #tpu.memory_space<any>>)
    return
  }
}

</mosaic_0001>

<bundles_post_ra>
// kernel: _select_one_pallas.1
= control target key start
LH: loop header
LB: loop body
LE: loop exit
PB: predicated region body
PF: predicated region fallthrough
CT: control target
= control target key end

     0   :  { %s40_s19 = smov [#allocation2]   ;;  %s41_s20 = smov [#allocation5]   ;;  %s67_s0 = inlined_call_operand.<no memory space> [shape: s32[1], index: 0, kind: input, shape index: {}]   ;;  %s68_s1 = inlined_call_operand.hbm [shape: s32[4,8,128], index: 1, kind: input, shape index: {}]   ;;  %s69_s2 = inlined_call_operand.hbm [shape: s32[8,128], index: 2, kind: output, shape index: {}]  }
   0x1   :  { %s33_s11 = sshll.u32 %s67_s0, 3  ;;  %s17_s14 = sshll.u32 %s69_s2, 4  ;;  %s18_s14 = int_to_ptr.hbm [resolvable:$true] %s17_s14 }
   0x2   :  { %s10_s17 = scalar_lea.hbm %s68_s1, %s33_s11  ;;  %s42_s21 = smov 0  }
   0x3   :  { %s15_s18 = sshll.u32 %s10_s17, 4  ;;  %s16_s18 = int_to_ptr.hbm [resolvable:$true] %s15_s18 }
   0x4   :  { %21 = dma.general %s16_s18, 128, %s18_s14, %s40_s19, %s41_s20, [#allocation6], %s42_s21, 0  }
   0x5   :  { %38 = dma.done.wait [#allocation2], 128 }
   0x6   :  { %39 = vsyncadd [#allocation2], 4294967168 }
   0x7   :  { %25 = vsyncmov [#allocation2] }
   0xa   :  { %s26_s22 = vpop.sfrf %25 }
   0xb   :  { %p34_p0 = scmp.ne.s32.totalorder %s26_s22, 0 }
   0xd   :  { %30 = shalt.err (%p34_p0)  }

</bundles_post_ra>
